<compile_context>
chip_gen: v7x
topology: tpu7x:2x2x1
jax: 0.10.0
libtpu: 0.0.40
codegen_flags: <defaults>
</compile_context>

<pallas_src>
import functools

import jax
import jax.numpy as jnp
from jax.experimental import pallas as pl
from jax.experimental.pallas import tpu as pltpu

_LANE = 128


def _round_up(x, m):
    return (x + m - 1) // m * m


def _cdiv(a, b):
    return -(-a // b)


def _dice_stats_kernel(logits_ref, labels_ref, out_ref, *,
                       thw, hw_valid, needs_mask, activation):
    """Accumulate per-class [intersection, sum(p), sum(g)] over the HW grid axis."""
    hw_idx = pl.program_id(1)

    @pl.when(hw_idx == 0)
    def _():
        out_ref[...] = jnp.zeros_like(out_ref)

    x = logits_ref[...].astype(jnp.float32)        # (TB, C, THW), f32 on-chip only
    lbl = labels_ref[...]                          # (TB, 1, THW) int32
    c = x.shape[1]

    if activation == "softmax":
        # softmax over the channel (sublane) axis; one reciprocal per column on
        # the EUP instead of a full (C, THW) divide on the VALU.
        m = jnp.max(x, axis=1, keepdims=True)
        e = jnp.exp(x - m)
        denom = jnp.sum(e, axis=1, keepdims=True)            # (TB, 1, THW)
        p = e * pl.reciprocal(denom, approx=False)
    elif activation == "sigmoid":
        p = jax.nn.sigmoid(x)
    else:
        p = x

    # one-hot ground truth over the channel axis (padded labels are -1 -> all zero).
    class_ids = jax.lax.broadcasted_iota(jnp.int32, x.shape, 1)
    g = (class_ids == lbl).astype(jnp.float32)               # (TB, C, THW)

    if needs_mask:
        # zero out padded spatial columns so they do not contribute to sum(p).
        col = hw_idx * thw + jax.lax.broadcasted_iota(jnp.int32, (1, 1, thw), 2)
        p = p * (col < hw_valid).astype(jnp.float32)

    # lane reductions first (big -> small), then the tiny batch-tile reduction.
    inter = jnp.sum(jnp.sum(p * g, axis=2), axis=0).reshape(1, 1, c)
    sum_p = jnp.sum(jnp.sum(p, axis=2), axis=0).reshape(1, 1, c)
    sum_g = jnp.sum(jnp.sum(g, axis=2), axis=0).reshape(1, 1, c)

    # per-row accumulation (no lane-axis concatenation in the hot loop).
    out_ref[:, 0:1, :] += inter
    out_ref[:, 1:2, :] += sum_p
    out_ref[:, 2:3, :] += sum_g


def dice_loss_multiclass(y_pr, y_gt, *, eps=1e-6, beta=1.0, activation="softmax"):
    """y_pr: (B, C, H, W) float logits (any float dtype). y_gt: (B, H, W) int labels."""
    B, C, H, W = y_pr.shape
    HW = H * W
    itemsize = jnp.dtype(y_pr.dtype).itemsize

    # ---- spatial (lane) tile: largest block <= ~2 MiB of logits, lane aligned ----
    target_bytes = 2 * 1024 * 1024
    thw_max = max(_LANE, (target_bytes // max(1, C * itemsize)) // _LANE * _LANE)
    hw128 = _round_up(HW, _LANE)
    n_hw = max(1, _cdiv(hw128, thw_max))
    thw = _round_up(_cdiv(hw128, n_hw), _LANE)
    hw_pad = n_hw * thw
    needs_mask = hw_pad != HW

    # ---- fuse batch elements when images are small (amortize per-step overhead),
    #      but keep >= 2 batch tiles so v7x megacore can split the grid ----
    tb = 1
    cap = B // 2 if B >= 2 else 1
    for cand in range(max(cap, 1), 0, -1):
        if B % cand == 0 and cand * C * thw * itemsize <= target_bytes:
            tb = cand
            break
    n_b = B // tb

    # logits stay in their input dtype (bf16 input -> half the HBM traffic);
    # the f32 cast happens inside the kernel.
    logits = y_pr.reshape(B, C, HW)
    labels = y_gt.reshape(B, 1, HW).astype(jnp.int32)
    if hw_pad != HW:
        pad = hw_pad - HW
        logits = jnp.pad(logits, ((0, 0), (0, 0), (0, pad)))
        labels = jnp.pad(labels, ((0, 0), (0, 0), (0, pad)), constant_values=-1)

    block_bytes = tb * C * thw * itemsize + tb * thw * 4 + 3 * C * 4
    vmem_limit = int(min(64 * 1024 * 1024, max(32 * 1024 * 1024, 8 * block_bytes)))

    kernel = functools.partial(
        _dice_stats_kernel, thw=thw, hw_valid=HW, needs_mask=needs_mask,
        activation=activation)

    stats = pl.pallas_call(
        kernel,
        out_shape=jax.ShapeDtypeStruct((n_b, 3, C), jnp.float32),
        grid_spec=pltpu.PrefetchScalarGridSpec(
            num_scalar_prefetch=0,
            grid=(n_b, n_hw),
            in_specs=[
                pl.BlockSpec((tb, C, thw), lambda b, hw: (b, 0, hw)),
                pl.BlockSpec((tb, 1, thw), lambda b, hw: (b, 0, hw)),
            ],
            out_specs=pl.BlockSpec((1, 3, C), lambda b, hw: (b, 0, 0)),
        ),
        compiler_params=pltpu.CompilerParams(
            dimension_semantics=("parallel", "arbitrary"),
            vmem_limit_bytes=vmem_limit,
        ),
    )(logits, labels)

    # tiny epilogue in plain JAX: combine per-batch-tile partials, f-score.
    s = jnp.sum(stats, axis=0)                      # (3, C)
    inter, sum_p, sum_g = s[0], s[1], s[2]
    fp = sum_p - inter
    fn = sum_g - inter
    num = (1.0 + beta ** 2) * inter + eps
    den = (1.0 + beta ** 2) * inter + (beta ** 2) * fn + fp + eps
    # TODO(synk): the PyTorch module also accepts a pre-one-hot (B, C, H, W)
    # y_gt; only the integer-label ground-truth path is implemented here.
    return 1.0 - jnp.mean(num / den)


def _reference_dice_loss(y_pr, y_gt, eps=1e-6, beta=1.0):
    p = jax.nn.softmax(y_pr.astype(jnp.float32), axis=1)
    g = jax.nn.one_hot(y_gt, y_pr.shape[1], axis=1, dtype=jnp.float32)
    inter = jnp.sum(p * g, axis=(0, 2, 3))
    fp = jnp.sum(p * (1.0 - g), axis=(0, 2, 3))
    fn = jnp.sum((1.0 - p) * g, axis=(0, 2, 3))
    num = (1.0 + beta ** 2) * inter + eps
    den = (1.0 + beta ** 2) * inter + (beta ** 2) * fn + fp + eps
    return 1.0 - jnp.mean(num / den)


if __name__ == "__main__":
    key = jax.random.PRNGKey(0)

    # Case 1: f32 logits, lane-aligned spatial size.
    k1, k2, key = jax.random.split(key, 3)
    B, C, H, W = 2, 4, 16, 16
    y_pr = jax.random.normal(k1, (B, C, H, W), dtype=jnp.float32)
    y_gt = jax.random.randint(k2, (B, H, W), 0, C, dtype=jnp.int32)
    loss = jax.block_until_ready(dice_loss_multiclass(y_pr, y_gt))
    ref = jax.block_until_ready(_reference_dice_loss(y_pr, y_gt))
    assert jnp.allclose(loss, ref, atol=1e-5, rtol=1e-5), (loss, ref)

    # Case 2: non-lane-aligned spatial size (exercises padded-column masking).
    k1, k2, key = jax.random.split(key, 3)
    B2, C2, H2, W2 = 3, 3, 10, 10
    y_pr2 = jax.random.normal(k1, (B2, C2, H2, W2), dtype=jnp.float32)
    y_gt2 = jax.random.randint(k2, (B2, H2, W2), 0, C2, dtype=jnp.int32)
    loss2 = jax.block_until_ready(dice_loss_multiclass(y_pr2, y_gt2))
    ref2 = jax.block_until_ready(_reference_dice_loss(y_pr2, y_gt2))
    assert jnp.allclose(loss2, ref2, atol=1e-5, rtol=1e-5), (loss2, ref2)

    # Case 3: bf16 logits stay bf16 end-to-end in HBM (f32 math on-chip).
    k1, k2, key = jax.random.split(key, 3)
    y_pr3 = jax.random.normal(k1, (B, C, H, W), dtype=jnp.bfloat16)
    y_gt3 = jax.random.randint(k2, (B, H, W), 0, C, dtype=jnp.int32)
    loss3 = jax.block_until_ready(dice_loss_multiclass(y_pr3, y_gt3))
    ref3 = jax.block_until_ready(_reference_dice_loss(y_pr3, y_gt3))
    assert jnp.allclose(loss3, ref3, atol=1e-4, rtol=1e-4), (loss3, ref3)

    print("KERNEL_OK")
</pallas_src>

<mosaic_0001>
module attributes {stable_mosaic.version = 11 : i64} {
  func.func @_dice_stats_kernel(%arg0: i32, %arg1: i32, %arg2: memref<1x4x256xf32, #tpu.memory_space<vmem>>, %arg3: memref<1x1x256xi32, #tpu.memory_space<vmem>>, %arg4: memref<1x3x4xf32, #tpu.memory_space<vmem>>) attributes {dimension_semantics = [#tpu.dimension_semantics<parallel>, #tpu.dimension_semantics<arbitrary>], iteration_bounds = array<i64: 2, 1>, scalar_prefetch = 0 : i64, scratch_operands = 0 : i64, tpu.core_type = #tpu.core_type<tc>, window_params = [{transform_indices = @transform_0, window_bounds = array<i64: 1, 4, 256>}, {transform_indices = @transform_1, window_bounds = array<i64: 1, 1, 256>}, {transform_indices = @transform_2, window_bounds = array<i64: 1, 3, 4>}]} {
    %c0_i32 = arith.constant 0 : i32
    %0 = arith.cmpi eq, %arg1, %c0_i32 : i32
    %1 = arith.extui %0 : i1 to i32
    %c0_i32_0 = arith.constant 0 : i32
    %2 = arith.cmpi ne, %1, %c0_i32_0 : i32
    scf.if %2 {
      %cst_29 = arith.constant 0.000000e+00 : f32
      %39 = vector.broadcast %cst_29 : f32 to vector<1x3x4xf32>
      %c0_30 = arith.constant 0 : index
      %c0_31 = arith.constant 0 : index
      %c0_32 = arith.constant 0 : index
      %40 = vector.load %arg4[%c0_30, %c0_31, %c0_32] : memref<1x3x4xf32, #tpu.memory_space<vmem>>, vector<1x3x4xf32>
      tpu.vector_store %arg4[%c0_30, %c0_31, %c0_32], %39 {strides = array<i32>} : memref<1x3x4xf32, #tpu.memory_space<vmem>>, vector<1x3x4xf32>,
    } else {
    }
    %c0 = arith.constant 0 : index
    %c0_1 = arith.constant 0 : index
    %c0_2 = arith.constant 0 : index
    %3 = vector.load %arg2[%c0, %c0_1, %c0_2] : memref<1x4x256xf32, #tpu.memory_space<vmem>>, vector<1x4x256xf32>
    %c0_3 = arith.constant 0 : index
    %c0_4 = arith.constant 0 : index
    %c0_5 = arith.constant 0 : index
    %4 = vector.load %arg3[%c0_3, %c0_4, %c0_5] : memref<1x1x256xi32, #tpu.memory_space<vmem>>, vector<1x1x256xi32>
    %cst = arith.constant dense<0xFF800000> : vector<1x256xf32>
    %5 = vector.multi_reduction <maximumf>, %3, %cst [1] : vector<1x4x256xf32> to vector<1x256xf32>
    %6 = vector.shape_cast %5 : vector<1x256xf32> to vector<1x1x256xf32>
    %7 = vector.broadcast %6 : vector<1x1x256xf32> to vector<1x4x256xf32>
    %8 = arith.subf %3, %7 : vector<1x4x256xf32>
    %9 = math.exp %8 : vector<1x4x256xf32>
    %cst_6 = arith.constant dense<0.000000e+00> : vector<1x256xf32>
    %10 = vector.multi_reduction <add>, %9, %cst_6 [1] : vector<1x4x256xf32> to vector<1x256xf32>
    %11 = vector.shape_cast %10 : vector<1x256xf32> to vector<1x1x256xf32>
    %12 = tpu.reciprocal %11 : vector<1x1x256xf32> -> vector<1x1x256xf32>
    %13 = vector.broadcast %12 : vector<1x1x256xf32> to vector<1x4x256xf32>
    %14 = arith.mulf %9, %13 : vector<1x4x256xf32>
    %15 = tpu.iota {dimensions = array<i32: 1>} : vector<1x4x256xi32>
    %16 = vector.broadcast %4 : vector<1x1x256xi32> to vector<1x4x256xi32>
    %17 = arith.cmpi eq, %15, %16 : vector<1x4x256xi32>
    %18 = arith.extui %17 : vector<1x4x256xi1> to vector<1x4x256xi32>
    %19 = arith.sitofp %18 : vector<1x4x256xi32> to vector<1x4x256xf32>
    %20 = arith.mulf %14, %19 : vector<1x4x256xf32>
    %cst_7 = arith.constant dense<0.000000e+00> : vector<1x4xf32>
    %21 = vector.multi_reduction <add>, %20, %cst_7 [2] : vector<1x4x256xf32> to vector<1x4xf32>
    %cst_8 = arith.constant dense<0.000000e+00> : vector<4xf32>
    %22 = vector.multi_reduction <add>, %21, %cst_8 [0] : vector<1x4xf32> to vector<4xf32>
    %23 = vector.shape_cast %22 : vector<4xf32> to vector<1x1x4xf32>
    %cst_9 = arith.constant dense<0.000000e+00> : vector<1x4xf32>
    %24 = vector.multi_reduction <add>, %14, %cst_9 [2] : vector<1x4x256xf32> to vector<1x4xf32>
    %cst_10 = arith.constant dense<0.000000e+00> : vector<4xf32>
    %25 = vector.multi_reduction <add>, %24, %cst_10 [0] : vector<1x4xf32> to vector<4xf32>
    %26 = vector.shape_cast %25 : vector<4xf32> to vector<1x1x4xf32>
    %cst_11 = arith.constant dense<0.000000e+00> : vector<1x4xf32>
    %27 = vector.multi_reduction <add>, %19, %cst_11 [2] : vector<1x4x256xf32> to vector<1x4xf32>
    %cst_12 = arith.constant dense<0.000000e+00> : vector<4xf32>
    %28 = vector.multi_reduction <add>, %27, %cst_12 [0] : vector<1x4xf32> to vector<4xf32>
    %29 = vector.shape_cast %28 : vector<4xf32> to vector<1x1x4xf32>
    %c0_13 = arith.constant 0 : index
    %c0_14 = arith.constant 0 : index
    %c0_15 = arith.constant 0 : index
    %30 = vector.load %arg4[%c0_13, %c0_14, %c0_15] : memref<1x3x4xf32, #tpu.memory_space<vmem>>, vector<1x1x4xf32>
    %31 = arith.addf %30, %23 : vector<1x1x4xf32>
    %c0_16 = arith.constant 0 : index
    %c0_17 = arith.constant 0 : index
    %c0_18 = arith.constant 0 : index
    %32 = vector.load %arg4[%c0_16, %c0_17, %c0_18] : memref<1x3x4xf32, #tpu.memory_space<vmem>>, vector<1x1x4xf32>
    tpu.vector_store %arg4[%c0_16, %c0_17, %c0_18], %31 {strides = array<i32>} : memref<1x3x4xf32, #tpu.memory_space<vmem>>, vector<1x1x4xf32>,
    %c0_19 = arith.constant 0 : index
    %c1 = arith.constant 1 : index
    %c0_20 = arith.constant 0 : index
    %33 = vector.load %arg4[%c0_19, %c1, %c0_20] : memref<1x3x4xf32, #tpu.memory_space<vmem>>, vector<1x1x4xf32>
    %34 = arith.addf %33, %26 : vector<1x1x4xf32>
    %c0_21 = arith.constant 0 : index
    %c1_22 = arith.constant 1 : index
    %c0_23 = arith.constant 0 : index
    %35 = vector.load %arg4[%c0_21, %c1_22, %c0_23] : memref<1x3x4xf32, #tpu.memory_space<vmem>>, vector<1x1x4xf32>
    tpu.vector_store %arg4[%c0_21, %c1_22, %c0_23], %34 {strides = array<i32>} : memref<1x3x4xf32, #tpu.memory_space<vmem>>, vector<1x1x4xf32>,
    %c0_24 = arith.constant 0 : index
    %c2 = arith.constant 2 : index
    %c0_25 = arith.constant 0 : index
    %36 = vector.load %arg4[%c0_24, %c2, %c0_25] : memref<1x3x4xf32, #tpu.memory_space<vmem>>, vector<1x1x4xf32>
    %37 = arith.addf %36, %29 : vector<1x1x4xf32>
    %c0_26 = arith.constant 0 : index
    %c2_27 = arith.constant 2 : index
    %c0_28 = arith.constant 0 : index
    %38 = vector.load %arg4[%c0_26, %c2_27, %c0_28] : memref<1x3x4xf32, #tpu.memory_space<vmem>>, vector<1x1x4xf32>
    tpu.vector_store %arg4[%c0_26, %c2_27, %c0_28], %37 {strides = array<i32>} : memref<1x3x4xf32, #tpu.memory_space<vmem>>, vector<1x1x4xf32>,
    return
  }
  func.func @transform_0(%arg0: i32, %arg1: i32) -> (i32, i32, i32) {
    %c0_i32 = arith.constant 0 : i32
    %c0_i32_0 = arith.constant 0 : i32
    return %arg0, %c0_i32, %arg1 : i32, i32, i32
  }
  func.func @transform_1(%arg0: i32, %arg1: i32) -> (i32, i32, i32) {
    %c0_i32 = arith.constant 0 : i32
    %c0_i32_0 = arith.constant 0 : i32
    return %arg0, %c0_i32, %arg1 : i32, i32, i32
  }
  func.func @transform_2(%arg0: i32, %arg1: i32) -> (i32, i32, i32) {
    %c0_i32 = arith.constant 0 : i32
    %c0_i32_0 = arith.constant 0 : i32
    %c0_i32_1 = arith.constant 0 : i32
    return %arg0, %c0_i32, %c0_i32_0 : i32, i32, i32
  }
}

</mosaic_0001>

<bundles_post_ra>
// kernel: tpu_custom_call.1
= control target key start
LH: loop header
LB: loop body
LE: loop exit
PB: predicated region body
PF: predicated region fallthrough
CT: control target
= control target key end

     0   :  { %7 = vsyncpa [#allocation3], 0  ;;  %s866_s0 = inlined_call_operand.hbm [shape: f32[2,4,256], index: 0, kind: input, shape index: {}]   ;;  %s867_s1 = inlined_call_operand.hbm [shape: s32[2,1,256], index: 1, kind: input, shape index: {}]   ;;  %s868_s2 = inlined_call_operand.vmem [shape: f32[2,3,4], index: 2, kind: output, shape index: {}]  }
   0x1   :  { %9 = vsyncpa [#allocation3 + $0x1], 0 }
   0x2   :  { %10 = vsyncpa [#allocation5], 0 }
   0x3   :  { %12 = vsyncpa [#allocation5 + $0x1], 0  ;;  %s676_s9 = smov 0   ;;  %s678_s10 = smov 0  }
   0x4   :  { %s680_s11 = smov 0   ;;  %s682_s12 = smov 0  }
   0x5   :  { %s684_s13 = smov 0   ;;  %s686_s14 = smov 0  }
   0x6 LB: > { %s454_s15 = sadd.s32 4294967295, %s656_s14   ;;  %s30_s16 = sadd.s32 1, %s652_s13  ;;  %s656_s14 = sphi %s686_s14, %s18_s14   ;;  %s652_s13 = sphi %s684_s13, %s882_s13   ;;  %s648_s12 = sphi %s682_s12, %s881_s12   ;;  %s644_s11 = sphi %s680_s11, %s880_s11   ;;  %s640_s10 = sphi %s678_s10, %s879_s10   ;;  %s636_s9 = sphi %s676_s9, %s878_s9  }
   0x7   : > { %p32_p0 = scmp.ge.s32.totalorder %s30_s16, 2  ;;  %s39_s17 = sadd.s32 1, %s644_s11 }
   0x8   : > { %p46_p1 = scmp.ne.s32.totalorder %s644_s11, %s640_s10  ;;  %p47_p2 = scmp.eq.s32.totalorder %s656_s14, 0 }
   0x9   : > { %s884_s16 = smov (%p32_p0, %s30_s16), 0  ;;  %p52_p4 = scmp.ne.s32.totalorder %s640_s10, %s636_s9 }
   0xa   : > { %p712_p3 = por %p47_p2, %p46_p1  ;;  %s34_s19 = ssub.s32 %s652_s13, %s884_s16 }
   0xb   : > { %p53_p5 = scmp.eq.s32.totalorder %s454_s15, 0  ;;  %p37_p6 = scmp.eq.s32.totalorder %s34_s19, 0 }
   0xc   : > { %p485_p8 = scmp.lt.s32.totalorder %s656_s14, 2  ;;  %s728_s22 = sand.u32 1, %s644_s11  }
   0xd   : > { %p719_p7 = por %p53_p5, %p52_p4  ;;  %s472_s23 = sshll.u32 %s652_s13, 7 }
   0xe   : > { %s725_s21 = scalar_select %p37_p6, %s644_s11, %s39_s17  }
   0xf   : > { %s871_s20 = scalar_select %p719_p7, 1, 0 }
  0x10   : > { %s458_s24 = sshll.u32 %s728_s22, 3  ;;  %s735_s27 = scalar_lea.hbm %s866_s0, %s472_s23 }
  0x11   : > { %s134_s28 = scalar_lea.vmem [#allocation2], %s458_s24  ;;  %p739_p9 = pnand %p485_p8, %p712_p3 }
  0x12   : > { %s144_s29 = sshll.u32 %s134_s28, 4  ;;  %s131_s3 = scalar_lea.sflag [#allocation3], %s728_s22  ;;  %s743_s29 = int_to_ptr.vmem [resolvable:$true] %s144_s29 }
  0x13   : > { %s542_s4 = scalar_lea.hbm %s735_s27, 128  ;;  %p544_p13 = pneg %p739_p9 }
  0x14   : > { %p543_p12 = scmp.ne.s32.totalorder %s735_s27, %s542_s4  ;;  %s547_s7 = scalar_lea.hbm %s866_s0, 256 }
  0x15   : > { %p548_p2 = scmp.lt.u32.totalorder %s735_s27, %s866_s0  ;;  %p549_p3 = scmp.lt.u32.totalorder %s547_s7, %s542_s4 }
  0x16   : > { %p545_p0 = pnand %p544_p13, %p543_p12  ;;  %p551_p5 = scmp.lt.u32.totalorder %s542_s4, %s735_s27 }
  0x17   : > { %p550_p4 = por %p549_p3, %p548_p2 }
  0x18   : > { %p546_p1 = pneg %p545_p0 }
  0x19   : > { %p552_p6 = por %p551_p5, %p550_p4 }
  0x1b   : > { %p553_p8 = pnand %p552_p6, %p546_p1 }
  0x1d   : > { %556 = shalt.err (!%p553_p8)
}
  0x1e   : > { %s557_s15 = scalar_lea.vmem %s743_s29, 128  ;;  %s658_s17 = smov [#allocation2]  }
  0x1f   : > { %p558_p12 = scmp.ne.s32.totalorder %s743_s29, %s557_s15  ;;  %s562_s18 = sshll.u32 %s658_s17, 4  ;;  %s563_s18 = int_to_ptr.vmem [resolvable:$false] %s562_s18 }
  0x20   : > { %s564_s19 = scalar_lea.vmem %s563_s18, 256  ;;  %p565_p11 = scmp.lt.s32.totalorder %s743_s29, %s563_s18 }
  0x21   : > { %p560_p0 = pnand %p558_p12, %p544_p13  ;;  %p566_p2 = scmp.lt.s32.totalorder %s564_s19, %s557_s15 }
  0x23   : > { %p561_p10 = pneg %p560_p0  ;;  %p567_p3 = por %p566_p2, %p565_p11 }
  0x25   : > { %p568_p4 = pnand %p567_p3, %p561_p10 }
  0x27   : > { %571 = shalt.err (!%p568_p4)
}
  0x28   : > { %481 = dma.hbm_to_vmem [thread:$0]  (!%p739_p9), %s735_s27, 128, %s743_s29, %s131_s3  }
  0x29   : > { %p873_p1 = scmp.lt.s32.totalorder %s656_s14, 3  ;;  %p874_p5 = scmp.ge.s32.totalorder %s656_s14, 1 }
  0x2a   : > { %s461_s24 = sshll.u32 %s728_s22, 1  ;;  %s473_s25 = sshll.u32 %s652_s13, 5 }
  0x2b   : > { %p777_p6 = pnand %p874_p5, %p873_p1  ;;  %s786_s4 = scalar_lea.hbm %s867_s1, %s473_s25 }
  0x2c   : > { %s155_s5 = scalar_lea.vmem [#allocation4], %s461_s24  ;;  %s152_s27 = scalar_lea.sflag [#allocation5], %s728_s22 }
  0x2d   : > { %s875_s23 = scalar_select %p777_p6, 1, 0 }
  0x2e   : > { %s165_s6 = sshll.u32 %s155_s5, 4  ;;  %s572_s29 = scalar_lea.hbm %s786_s4, 32  ;;  %s166_s6 = int_to_ptr.vmem [resolvable:$true] %s165_s6 }
  0x2f   : > { %p573_p10 = scmp.ne.s32.totalorder %s786_s4, %s572_s29  ;;  %s577_s8 = scalar_lea.hbm %s867_s1, 64 }
  0x30   : > { %p578_p12 = scmp.lt.u32.totalorder %s786_s4, %s867_s1  ;;  %p579_p0 = scmp.lt.u32.totalorder %s577_s8, %s572_s29 }
  0x31   : > { %p575_p11 = pnand %p573_p10, %p544_p13  ;;  %p581_p3 = scmp.lt.u32.totalorder %s572_s29, %s786_s4 }
  0x32   : > { %p580_p2 = por %p579_p0, %p578_p12 }
  0x33   : > { %p576_p8 = pneg %p575_p11 }
  0x34   : > { %p582_p4 = por %p581_p3, %p580_p2 }
  0x36   : > { %p583_p1 = pnand %p582_p4, %p576_p8 }
  0x38   : > { %586 = shalt.err (!%p583_p1)
}
  0x39   : > { %s587_s22 = scalar_lea.vmem %s166_s6, 32  ;;  %s659_s17 = smov [#allocation4]  }
  0x3a   : > { %p588_p5 = scmp.ne.s32.totalorder %s166_s6, %s587_s22  ;;  %s592_s18 = sshll.u32 %s659_s17, 4  ;;  %s593_s18 = int_to_ptr.vmem [resolvable:$false] %s592_s18 }
  0x3b   : > { %s594_s19 = scalar_lea.vmem %s593_s18, 64  ;;  %p595_p7 = scmp.lt.s32.totalorder %s166_s6, %s593_s18 }
  0x3c   : > { %p590_p10 = pnand %p588_p5, %p544_p13  ;;  %p596_p6 = scmp.lt.s32.totalorder %s594_s19, %s587_s22 }
  0x3e   : > { %p591_p11 = pneg %p590_p10  ;;  %p597_p0 = por %p596_p6, %p595_p7 }
  0x40   : > { %p598_p12 = pnand %p597_p0, %p591_p11 }
  0x42   : > { %601 = shalt.err (!%p598_p12)
}
  0x43   : > { %484 = dma.hbm_to_vmem [thread:$0]  (!%p739_p9), %s786_s4, 32, %s166_s6, %s152_s27  }
  0x44   : > { %p876_p8 = scmp.ne.s32.totalorder %s875_s23, 0 }
  0x45   : > { %s176_s24 = sand.u32 (!%p876_p8), 1, %s640_s10   ;;  %p877_p13 = scmp.ne.s32.totalorder (!%p876_p8), %s871_s20, 0 }
  0x46   : > { %174 = sbr.rel (%p876_p8) target bundleno = 303 (0x12f), region = 28  ;;  %s465_s25 = sshll.u32 (!%p876_p8), %s176_s24, 3 }
  0x47   : > { %s177_s26 = scalar_lea.sflag (!%p876_p8), [#allocation3], %s176_s24  ;;  %s180_s28 = scalar_lea.vmem (!%p876_p8), [#allocation2], %s465_s25 }
  0x4d   : > { %627 = dma.done.wait (%p877_p13), %s177_s26, 128  }
  0x4e   : > { %629 = vsyncadd (%p877_p13), %s177_s26, 4294967168  ;;  %s466_s5 = sshll.u32 %s176_s24, 1  ;;  %s186_s29 = scalar_lea.sflag [#allocation5], %s176_s24 }
  0x4f   : > { %s189_s30 = scalar_lea.vmem [#allocation4], %s466_s5 }
  0x50   : > { %631 = dma.done.wait (%p877_p13), %s186_s29, 32  }
  0x51   : > { %633 = vsyncadd (%p877_p13), %s186_s29, 4294967264  ;;  %p216_p7 = scmp.lt.s32.totalorder %s648_s12, 1  ;;  %v277_v0 = vlaneseq  ;;  %vm224_vm0 = vcmask 26624   ;;  %vm231_vm1 = vcmask 1043456   ;;  %v660_v6 = vmov 0.0   ;;  %v226_v7 = vld [vmem:[%s180_s28] sm:$0xff] }
  0x52   : > { %v227_v8 = vld [vmem:[%s189_s30] sm:$0x3]  ;;  %v229_v9 = vcombine.high %v226_v7, %v226_v7  ;;  %v232_v10 = vsel %vm231_vm1, %v226_v7, -inf  ;;  %vm332_vm4 = vcmask 24576  }
  0x53   : > { %s886_s12 = smov (!%p216_p7, %s648_s12), 1  ;;  %v278_v1 = vshrl.u32 %v277_v0, 7  ;;  %v325_v2 = vand.u32 127, %v277_v0  ;;  %v233_v13 = vrot.slane %v232_v10, 4 }
  0x54   : > { %s467_s23 = sshll.u32 %s886_s12, 2  ;;  %v239_v14 = vsel %vm231_vm1, %v229_v9, -inf }
  0x55   : > { %v281_v3 = vsub.s32 0, %v278_v1  ;;  %v285_v4 = vsub.s32 1, %v278_v1  ;;  %v821_v5 = vsub.s32 %v325_v2, %v278_v1  ;;  %s826_s27 = scalar_lea.vmem %s868_s2, %s467_s23  ;;  %v234_v15 = vmax.f32 %v232_v10, %v233_v13 }
  0x56   : > { %225 = vst.msk [vmem:[%s826_s27] sm:$0x7] %vm224_vm0, %v660_v6  ;;  %v240_v16 = vrot.slane %v239_v14, 4 }
  0x57   : > { %v282_v11 = vrot.slane %v227_v8, %v281_v3  ;;  %v286_v12 = vrot.slane %v227_v8, %v285_v4  ;;  %v235_v21 = vrot.slane %v234_v15, 2 }
  0x58   : > { %v241_v22 = vmax.f32 %v239_v14, %v240_v16 }
  0x59   : > { %vm287_vm2 = vcmp.eq.s32.totalorder %v278_v1, %v282_v11  ;;  %vm288_vm3 = vcmp.eq.s32.totalorder %v278_v1, %v286_v12  ;;  %v236_v24 = vmax.f32 %v234_v15, %v235_v21 }
  0x5a   : > { %v468_v17 = vsel %vm287_vm2, 1.0, %v660_v6  ;;  %v469_v18 = vsel %vm288_vm3, 1.0, %v660_v6  ;;  %v242_v25 = vrot.slane %v241_v22, 2 }
  0x5b   : > { %v316_v19 = vsel %vm231_vm1, %v468_v17, 0.0  ;;  %v317_v20 = vsel %vm231_vm1, %v469_v18, 0.0  ;;  %v237_v26 = vrot.slane %v236_v24, 1  ;;  %v295_v53 = vcombine.low %v468_v17, %v469_v18 }
  0x5c   : > { %v318_v23 = vadd.f32 %v317_v20, %v316_v19  ;;  %v243_v27 = vmax.f32 %v241_v22, %v242_v25 }
  0x5d   : > { %v238_v28 = vmax.f32 %v236_v24, %v237_v26  ;;  %v343_v1 = vld [vmem:[%s826_s27 + $0x2] sm:$0x1]  ;;  %v322_v6 = vld [vmem:[%s826_s27] sm:$0x1]  ;;  %v334_v10 = vld [vmem:[%s826_s27 + $0x1] sm:$0x1] }
  0x5e   : > { %319 = vadd.xlane.f32.xlu1 %v318_v23  ;;  %v244_v29 = vrot.slane %v243_v27, 1 }
  0x60   : > { %v245_v30 = vmax.f32 %v243_v27, %v244_v29 }
  0x62   : > { %v248_v31 = vcombine.low %v238_v28, %v245_v30 }
  0x64   : > { %v250_v32 = vsub.f32 %v226_v7, %v248_v31 }
  0x66   : > { %v251_v33 = vmul.f32 1.442695, %v250_v32 }
  0x68   : > { %536 = vpow2.f32 %v251_v33 }
  0x72   : > { %v537_v34 = vpop.eup %536 }
  0x73   : > { %v254_v35 = vcombine.high %v537_v34, %v537_v34  ;;  %v256_v36 = vsel %vm231_vm1, %v537_v34, 0.0 }
  0x74   : > { %v257_v37 = vrot.slane %v256_v36, 4 }
  0x75   : > { %v263_v38 = vsel %vm231_vm1, %v254_v35, 0.0 }
  0x76   : > { %v258_v39 = vadd.f32 %v257_v37, %v256_v36  ;;  %v264_v40 = vrot.slane %v263_v38, 4 }
  0x78   : > { %v259_v41 = vrot.slane %v258_v39, 2  ;;  %v265_v42 = vadd.f32 %v264_v40, %v263_v38 }
  0x7a   : > { %v260_v43 = vadd.f32 %v259_v41, %v258_v39  ;;  %v266_v44 = vrot.slane %v265_v42, 2 }
  0x7c   : > { %v261_v45 = vrot.slane %v260_v43, 1  ;;  %v267_v46 = vadd.f32 %v266_v44, %v265_v42 }
  0x7e   : > { %v262_v47 = vadd.f32 %v261_v45, %v260_v43  ;;  %v268_v48 = vrot.slane %v267_v46, 1 }
  0x80   : > { %v269_v49 = vadd.f32 %v268_v48, %v267_v46  ;;  %538 = vrcp.f32 %v262_v47 }
  0x82   : > { %540 = vrcp.f32 %v269_v49 }
  0x8a   : > { %v539_v50 = vpop.eup %538 }
  0x8c   : > { %v541_v51 = vpop.eup %540 }
  0x8d   : > { %v274_v52 = vcombine.low %v539_v50, %v541_v51 }
  0x8f   : > { %v276_v54 = vmul.f32 %v537_v34, %v274_v52 }
  0x91   : > { %v297_v55 = vmul.f32 %v295_v53, %v276_v54  ;;  %v308_v56 = vcombine.high %v276_v54, %v276_v54  ;;  %v310_v60 = vsel %vm231_vm1, %v276_v54, 0.0 }
  0x93   : > { %v299_v57 = vcombine.high %v297_v55, %v297_v55  ;;  %v301_v58 = vsel %vm231_vm1, %v297_v55, 0.0  ;;  %v311_v61 = vsel %vm231_vm1, %v308_v56, 0.0 }
  0x94   : > { %v312_v63 = vadd.f32 %v311_v61, %v310_v60 }
  0x95   : > { %v302_v59 = vsel %vm231_vm1, %v299_v57, 0.0 }
  0x96   : > { %v303_v62 = vadd.f32 %v302_v59, %v301_v58 }
  0x98   : > { %304 = vadd.xlane.f32.xlu0 %v303_v62 }
  0x9c   : > { %313 = vadd.xlane.f32.xlu0 %v312_v63 }
  0xeb   : > { %v320_v0 = vpop.xlane.xlu1 %319 }
  0xec   : > { %v348_v2 = vrot.slane %v320_v0, %v821_v5 }
  0xee   : > { %v350_v3 = vadd.f32 %v348_v2, %v343_v1 }
  0xf0   : > { %351 = vst.msk [vmem:[%s826_s27 + $0x2] sm:$0x1] %vm332_vm4, %v350_v3 }
 0x125   : > { %v305_v4 = vpop.xlane.xlu0 %304 }
 0x126   : > { %v329_v7 = vrot.slane %v305_v4, %v821_v5 }
 0x128   : > { %v331_v8 = vadd.f32 %v329_v7, %v322_v6 }
 0x129   : > { %v314_v9 = vpop.xlane.xlu0 %313 }
 0x12a   : > { %333 = vst.msk [vmem:[%s826_s27] sm:$0x1] %vm332_vm4, %v331_v8  ;;  %v339_v11 = vrot.slane %v314_v9, %v821_v5 }
 0x12c   : > { %v341_v12 = vadd.f32 %v339_v11, %v334_v10 }
 0x12e   : > { %342 = vst.msk [vmem:[%s826_s27 + $0x1] sm:$0x1] %vm332_vm4, %v341_v12 }
 0x12f PF: > { %s18_s14 = sadd.s32 1, %s656_s14   ;;  %s878_s9 = smov %s640_s10 }
 0x130   : > { %p15_p9 = scmp.ge.s32.totalorder %s18_s14, 4   ;;  %s879_s10 = smov %s644_s11 }
 0x131   : > { %s880_s11 = smov %s725_s21  ;;  %s881_s12 = smov %s652_s13 }
 0x132   : > { %s882_s13 = smov %s884_s16  ;;  %17 = sbr.rel (!%p15_p9) target bundleno = 6 (0x6), region = 85 }
 0x139   :  { %371 = vsyncpa [#allocation3], 1 }
 0x13a   :  { %373 = vsyncpa [#allocation3 + $0x1], 1 }
 0x13b   :  { %374 = vsyncpa [#allocation5], 1 }
 0x13c   :  { %376 = vsyncpa [#allocation5 + $0x1], 1 }

</bundles_post_ra>
